<compile_context>
chip_gen: v7x
topology: tpu7x:2x2x1
jax: 0.10.0
libtpu: 0.0.40
codegen_flags: <defaults>
</compile_context>

<pallas_src>
import jax
import jax.numpy as jnp
from jax.experimental import pallas as pl
from jax.experimental.pallas import tpu as pltpu

LANES = 128  # TPU vreg lane width


def _mlp_kernel(x_ref, w1_ref, b1_ref, w2_ref, b2_ref, w3_ref, b3_ref, o_ref):
    """One batch tile of the fused MLP.

    x_ref : (TB, D)           f32 or bf16   streamed batch tile
    w1_ref: (D, 64)           bf16          resident
    b1_ref: (1, 64)           f32           resident
    w2_ref: (64, 32)          bf16          resident
    b2_ref: (1, 32)           f32           resident
    w3_ref: (1, 32)           f32           resident (row form of the (32,1) weight)
    b3_ref: (1, 1)            f32           resident
    o_ref : (1, TB//128, 128) f32           lane-dense output slab
    """
    x = x_ref[...]
    if x.dtype != jnp.bfloat16:       # accept bf16 inputs without a redundant cast
        x = x.astype(jnp.bfloat16)

    # MXU path: bf16 operands, f32 accumulation. Epilogue (bias, ReLU) stays f32.
    h1 = jnp.dot(x, w1_ref[...], preferred_element_type=jnp.float32) + b1_ref[...]
    h1 = jnp.maximum(h1, 0.0)         # ReLU; Dropout(0.2) == identity in eval mode
    h2 = jnp.dot(h1.astype(jnp.bfloat16), w2_ref[...],
                 preferred_element_type=jnp.float32) + b2_ref[...]
    h2 = jnp.maximum(h2, 0.0)         # ReLU; Dropout(0.2) == identity in eval mode

    # Final Linear(32 -> 1) on the otherwise-idle VPU/XLU: multiply + lane reduction.
    tb, h = h2.shape
    prod = h2 * w3_ref[...]                                                 # (TB, 32)
    out = jnp.sum(prod.reshape(tb // LANES, LANES, h), axis=-1) + b3_ref[...]
    # Lane-dense store: full 128-lane rows instead of a last-dim-1 block.
    o_ref[...] = out[None].astype(o_ref.dtype)


def prepare_params(params):
    """One-time weight prep (hoisted out of the per-call path): bf16 MXU weights, f32 epilogue
    params, and the (32,1) final weight as a (1,32) row for the VPU reduction."""
    w1, b1, w2, b2, w3, b3 = params
    return (
        w1.astype(jnp.bfloat16),
        b1.reshape(1, -1).astype(jnp.float32),
        w2.astype(jnp.bfloat16),
        b2.reshape(1, -1).astype(jnp.float32),
        w3.reshape(1, -1).astype(jnp.float32),
        b3.reshape(1, 1).astype(jnp.float32),
    )


def _choose_tile(batch, tile_batch):
    """Pick the batch tile: as large as tile_batch for DMA amortization, but floor the grid at
    >=4 tiles when the batch allows so the parallel axis shards across v7x's 2 TensorCores."""
    tb_quarter = pl.cdiv(pl.cdiv(batch, 4), LANES) * LANES   # round_up_128(ceil(batch/4))
    return max(LANES, min(tile_batch, tb_quarter))


def simple_nn_forward(x, prepared_params, *, tile_batch=2048):
    """Fused SimpleNN forward (eval mode).

    x: (B, D), f32 or bf16 (bf16 halves the streamed HBM bytes and is preferred when the
    caller already has it). Returns (B, 1) f32.
    """
    w1b, b1, w2b, b2, w3r, b3r = prepared_params
    batch, in_dim = x.shape
    h1_dim = w1b.shape[1]
    h2_dim = w2b.shape[1]

    assert tile_batch % LANES == 0, "tile_batch must be a multiple of 128"
    tb = _choose_tile(batch, tile_batch)
    num_tiles = pl.cdiv(batch, tb)       # ragged batch: partial final block, no jnp.pad
    b_cover = num_tiles * tb

    const = lambda i: (0, 0)
    out_shape = jax.ShapeDtypeStruct((num_tiles, tb // LANES, LANES), jnp.float32)

    weight_bytes = (w1b.size * 2 + w2b.size * 2
                    + (b1.size + b2.size + w3r.size + b3r.size) * 4)
    cost = pl.CostEstimate(
        flops=2 * b_cover * (in_dim * h1_dim + h1_dim * h2_dim + h2_dim),
        bytes_accessed=batch * in_dim * x.dtype.itemsize + b_cover * 4 + weight_bytes,
        transcendentals=0,
    )

    y = pl.pallas_call(
        _mlp_kernel,
        out_shape=out_shape,
        grid=(num_tiles,),
        in_specs=[
            pl.BlockSpec((tb, in_dim), lambda i: (i, 0)),   # x: streamed / double-buffered
            pl.BlockSpec((in_dim, h1_dim), const),          # w1 (resident, bf16)
            pl.BlockSpec((1, h1_dim), const),               # b1 (resident)
            pl.BlockSpec((h1_dim, h2_dim), const),          # w2 (resident, bf16)
            pl.BlockSpec((1, h2_dim), const),               # b2 (resident)
            pl.BlockSpec((1, h2_dim), const),               # w3 row (resident)
            pl.BlockSpec((1, 1), const),                    # b3 (resident)
        ],
        out_specs=pl.BlockSpec((1, tb // LANES, LANES), lambda i: (i, 0, 0)),
        compiler_params=pltpu.CompilerParams(
            dimension_semantics=("parallel",),  # independent batch tiles; shards across v7x TCs
        ),
        cost_estimate=cost,
    )(x, w1b, b1, w2b, b2, w3r, b3r)

    # Layout plumbing only: view the lane-dense slab back as (B, 1) and drop tail rows that
    # came from the partial final block.
    return y.reshape(b_cover, 1)[:batch]


def init_params(key, input_dim):
    # Deterministic init mimicking nn.Linear's uniform(-1/sqrt(fan_in), 1/sqrt(fan_in)).
    # Weights are stored as (in_features, out_features) so forward computes y = x @ W + b.
    ks = jax.random.split(key, 6)

    def linear(kw, kb, fan_in, fan_out):
        bound = 1.0 / jnp.sqrt(fan_in)
        w = jax.random.uniform(kw, (fan_in, fan_out), jnp.float32, -bound, bound)
        b = jax.random.uniform(kb, (1, fan_out), jnp.float32, -bound, bound)
        return w, b

    w1, b1 = linear(ks[0], ks[1], input_dim, 64)
    w2, b2 = linear(ks[2], ks[3], 64, 32)
    w3, b3 = linear(ks[4], ks[5], 32, 1)
    return w1, b1, w2, b2, w3, b3


if __name__ == "__main__":
    key = jax.random.PRNGKey(0)
    k_x, k_p = jax.random.split(key)

    # Ragged batch (500 rows, not a multiple of 128) exercises the no-pad partial-block path;
    # the >=4-tile floor makes this run as 4 grid steps of TB=128.
    batch, input_dim = 500, 32
    x = jax.random.normal(k_x, (batch, input_dim), dtype=jnp.float32)
    params = init_params(k_p, input_dim)
    prepared = prepare_params(params)     # one-time weight prep, outside the hot path

    fwd = jax.jit(simple_nn_forward)
    y = fwd(x, prepared)
    jax.block_until_ready(y)

    # f32 reference (eval-mode dropout == identity). Kernel uses bf16 MXU operands with f32
    # accumulation, so compare with a bf16-appropriate tolerance.
    w1, b1, w2, b2, w3, b3 = params
    ref = jnp.maximum(x @ w1 + b1, 0.0)
    ref = jnp.maximum(ref @ w2 + b2, 0.0)
    ref = ref @ w3 + b3
    assert y.shape == (batch, 1)
    assert jnp.allclose(y, ref, atol=3e-2, rtol=3e-2), float(jnp.max(jnp.abs(y - ref)))

    print("KERNEL_OK")
</pallas_src>

<mosaic_0001>
module attributes {stable_mosaic.version = 11 : i64} {
  func.func @_mlp_kernel(%arg0: i32, %arg1: memref<128x32xf32, #tpu.memory_space<vmem>>, %arg2: memref<32x64xbf16, #tpu.memory_space<vmem>>, %arg3: memref<1x64xf32, #tpu.memory_space<vmem>>, %arg4: memref<64x32xbf16, #tpu.memory_space<vmem>>, %arg5: memref<1x32xf32, #tpu.memory_space<vmem>>, %arg6: memref<1x32xf32, #tpu.memory_space<vmem>>, %arg7: memref<1x1xf32, #tpu.memory_space<vmem>>, %arg8: memref<1x1x128xf32, #tpu.memory_space<vmem>>) attributes {dimension_semantics = [#tpu.dimension_semantics<parallel>], iteration_bounds = array<i64: 4>, scalar_prefetch = 0 : i64, scratch_operands = 0 : i64, tpu.core_type = #tpu.core_type<tc>, window_params = [{transform_indices = @transform_0, window_bounds = array<i64: 128, 32>}, {pipeline_mode = #tpu.pipeline_mode<synchronous>, transform_indices = @transform_1, window_bounds = array<i64: 32, 64>}, {pipeline_mode = #tpu.pipeline_mode<synchronous>, transform_indices = @transform_2, window_bounds = array<i64: 1, 64>}, {pipeline_mode = #tpu.pipeline_mode<synchronous>, transform_indices = @transform_3, window_bounds = array<i64: 64, 32>}, {pipeline_mode = #tpu.pipeline_mode<synchronous>, transform_indices = @transform_4, window_bounds = array<i64: 1, 32>}, {pipeline_mode = #tpu.pipeline_mode<synchronous>, transform_indices = @transform_5, window_bounds = array<i64: 1, 32>}, {pipeline_mode = #tpu.pipeline_mode<synchronous>, transform_indices = @transform_6, window_bounds = array<i64: 1, 1>}, {transform_indices = @transform_7, window_bounds = array<i64: 1, 1, 128>}]} {
    %c0 = arith.constant 0 : index
    %c0_0 = arith.constant 0 : index
    %0 = vector.load %arg1[%c0, %c0_0] : memref<128x32xf32, #tpu.memory_space<vmem>>, vector<128x32xf32>
    %1 = arith.truncf %0 : vector<128x32xf32> to vector<128x32xbf16>
    %c0_1 = arith.constant 0 : index
    %c0_2 = arith.constant 0 : index
    %2 = vector.load %arg2[%c0_1, %c0_2] : memref<32x64xbf16, #tpu.memory_space<vmem>>, vector<32x64xbf16>
    %cst = arith.constant dense<0.000000e+00> : vector<128x64xf32>
    %3 = tpu.matmul %1, %2, %cst {dimension_numbers = #tpu.dot_dimension_numbers<[1], [0], [0], [1], [0, 0, 1, 1], [], []>} : vector<128x32xbf16>, vector<32x64xbf16>, vector<128x64xf32> -> vector<128x64xf32>
    %c0_3 = arith.constant 0 : index
    %c0_4 = arith.constant 0 : index
    %4 = vector.load %arg3[%c0_3, %c0_4] : memref<1x64xf32, #tpu.memory_space<vmem>>, vector<1x64xf32>
    %5 = vector.broadcast %4 : vector<1x64xf32> to vector<128x64xf32>
    %6 = arith.addf %3, %5 : vector<128x64xf32>
    %cst_5 = arith.constant 0.000000e+00 : f32
    %7 = vector.broadcast %cst_5 : f32 to vector<128x64xf32>
    %8 = arith.maximumf %6, %7 : vector<128x64xf32>
    %9 = arith.truncf %8 : vector<128x64xf32> to vector<128x64xbf16>
    %c0_6 = arith.constant 0 : index
    %c0_7 = arith.constant 0 : index
    %10 = vector.load %arg4[%c0_6, %c0_7] : memref<64x32xbf16, #tpu.memory_space<vmem>>, vector<64x32xbf16>
    %cst_8 = arith.constant dense<0.000000e+00> : vector<128x32xf32>
    %11 = tpu.matmul %9, %10, %cst_8 {dimension_numbers = #tpu.dot_dimension_numbers<[1], [0], [0], [1], [0, 0, 1, 1], [], []>} : vector<128x64xbf16>, vector<64x32xbf16>, vector<128x32xf32> -> vector<128x32xf32>
    %c0_9 = arith.constant 0 : index
    %c0_10 = arith.constant 0 : index
    %12 = vector.load %arg5[%c0_9, %c0_10] : memref<1x32xf32, #tpu.memory_space<vmem>>, vector<1x32xf32>
    %13 = vector.broadcast %12 : vector<1x32xf32> to vector<128x32xf32>
    %14 = arith.addf %11, %13 : vector<128x32xf32>
    %cst_11 = arith.constant 0.000000e+00 : f32
    %15 = vector.broadcast %cst_11 : f32 to vector<128x32xf32>
    %16 = arith.maximumf %14, %15 : vector<128x32xf32>
    %c0_12 = arith.constant 0 : index
    %c0_13 = arith.constant 0 : index
    %17 = vector.load %arg6[%c0_12, %c0_13] : memref<1x32xf32, #tpu.memory_space<vmem>>, vector<1x32xf32>
    %18 = vector.broadcast %17 : vector<1x32xf32> to vector<128x32xf32>
    %19 = arith.mulf %16, %18 : vector<128x32xf32>
    %20 = vector.shape_cast %19 : vector<128x32xf32> to vector<1x128x32xf32>
    %cst_14 = arith.constant dense<0.000000e+00> : vector<1x128xf32>
    %21 = vector.multi_reduction <add>, %20, %cst_14 [2] : vector<1x128x32xf32> to vector<1x128xf32>
    %c0_15 = arith.constant 0 : index
    %c0_16 = arith.constant 0 : index
    %22 = vector.load %arg7[%c0_15, %c0_16] : memref<1x1xf32, #tpu.memory_space<vmem>>, vector<1x1xf32>
    %23 = vector.broadcast %22 : vector<1x1xf32> to vector<1x128xf32>
    %24 = arith.addf %21, %23 : vector<1x128xf32>
    %25 = vector.shape_cast %24 : vector<1x128xf32> to vector<1x1x128xf32>
    %c0_17 = arith.constant 0 : index
    %c0_18 = arith.constant 0 : index
    %c0_19 = arith.constant 0 : index
    %26 = vector.load %arg8[%c0_17, %c0_18, %c0_19] : memref<1x1x128xf32, #tpu.memory_space<vmem>>, vector<1x1x128xf32>
    tpu.vector_store %arg8[%c0_17, %c0_18, %c0_19], %25 {strides = array<i32>} : memref<1x1x128xf32, #tpu.memory_space<vmem>>, vector<1x1x128xf32>,
    return
  }
  func.func @transform_0(%arg0: i32) -> (i32, i32) {
    %c0_i32 = arith.constant 0 : i32
    %c0_i32_0 = arith.constant 0 : i32
    return %arg0, %c0_i32 : i32, i32
  }
  func.func @transform_1(%arg0: i32) -> (i32, i32) {
    %c0_i32 = arith.constant 0 : i32
    %c0_i32_0 = arith.constant 0 : i32
    %c0_i32_1 = arith.constant 0 : i32
    return %c0_i32, %c0_i32_0 : i32, i32
  }
  func.func @transform_2(%arg0: i32) -> (i32, i32) {
    %c0_i32 = arith.constant 0 : i32
    %c0_i32_0 = arith.constant 0 : i32
    %c0_i32_1 = arith.constant 0 : i32
    return %c0_i32, %c0_i32_0 : i32, i32
  }
  func.func @transform_3(%arg0: i32) -> (i32, i32) {
    %c0_i32 = arith.constant 0 : i32
    %c0_i32_0 = arith.constant 0 : i32
    %c0_i32_1 = arith.constant 0 : i32
    return %c0_i32, %c0_i32_0 : i32, i32
  }
  func.func @transform_4(%arg0: i32) -> (i32, i32) {
    %c0_i32 = arith.constant 0 : i32
    %c0_i32_0 = arith.constant 0 : i32
    %c0_i32_1 = arith.constant 0 : i32
    return %c0_i32, %c0_i32_0 : i32, i32
  }
  func.func @transform_5(%arg0: i32) -> (i32, i32) {
    %c0_i32 = arith.constant 0 : i32
    %c0_i32_0 = arith.constant 0 : i32
    %c0_i32_1 = arith.constant 0 : i32
    return %c0_i32, %c0_i32_0 : i32, i32
  }
  func.func @transform_6(%arg0: i32) -> (i32, i32) {
    %c0_i32 = arith.constant 0 : i32
    %c0_i32_0 = arith.constant 0 : i32
    %c0_i32_1 = arith.constant 0 : i32
    return %c0_i32, %c0_i32_0 : i32, i32
  }
  func.func @transform_7(%arg0: i32) -> (i32, i32, i32) {
    %c0_i32 = arith.constant 0 : i32
    %c0_i32_0 = arith.constant 0 : i32
    %c0_i32_1 = arith.constant 0 : i32
    return %arg0, %c0_i32, %c0_i32_0 : i32, i32, i32
  }
}

</mosaic_0001>

<bundles_post_ra>
// kernel: simple_nn_forward.1
= control target key start
LH: loop header
LB: loop body
LE: loop exit
PB: predicated region body
PF: predicated region fallthrough
CT: control target
= control target key end

     0   :  { %s1496_s0 = inlined_call_operand.vmem [shape: f32[500,32], index: 0, kind: input, shape index: {}]   ;;  %s1497_s1 = inlined_call_operand.vmem [shape: bf16[32,64], index: 1, kind: input, shape index: {}]   ;;  %s1498_s2 = inlined_call_operand.vmem [shape: f32[1,64], index: 2, kind: input, shape index: {}]   ;;  %s1499_s3 = inlined_call_operand.vmem [shape: bf16[64,32], index: 3, kind: input, shape index: {}]   ;;  %s1500_s4 = inlined_call_operand.vmem [shape: f32[1,32], index: 4, kind: input, shape index: {}]   ;;  %s1501_s5 = inlined_call_operand.vmem [shape: f32[1,32], index: 5, kind: input, shape index: {}]   ;;  %s1502_s6 = inlined_call_operand.<no memory space> [shape: f32[1,1], index: 6, kind: input, shape index: {}]   ;;  %s1503_s7 = inlined_call_operand.hbm [shape: f32[4,1,128], index: 7, kind: output, shape index: {}]  }
   0x1   :  { %v12_v0 = vstv %s1502_s6 }
   0x2   :  { %13 = vst [vmem:[#allocation2] sm:$0x1] %v12_v0 }
   0x3   :  { %14 = vsyncpa [#allocation4], 0 }
   0x4   :  { %16 = vsyncpa [#allocation4 + $0x1], 0  ;;  %s1222_s26 = smov 0   ;;  %s1224_s27 = smov 0  }
   0x5   :  { %s1226_s28 = smov 0   ;;  %s1228_s29 = smov 0  }
   0x6 LB: > { %s964_s6 = sadd.s32 4294967295, %s1175_s29   ;;  %s965_s30 = sadd.s32 4294967294, %s1175_s29   ;;  %s1175_s29 = sphi %s1228_s29, %s1509_s29   ;;  %s1171_s28 = sphi %s1226_s28, %s1508_s28   ;;  %s1167_s27 = sphi %s1224_s27, %s1507_s27   ;;  %s1163_s26 = sphi %s1222_s26, %s1506_s26  }
   0x7   : > { %s1245_s8 = sadd.s32 1, %s1175_s29   ;;  %s181_s9 = sadd.s32 1, %s1171_s28 }
   0x8   : > { %s178_s10 = ssub.s32 %s1175_s29, %s1245_s8  ;;  %p191_p0 = scmp.ne.s32.totalorder %s1171_s28, %s1167_s27 }
   0x9   : > { %p179_p1 = scmp.eq.s32.totalorder %s178_s10, 0  ;;  %p192_p2 = scmp.eq.s32.totalorder %s964_s6, 3 }
   0xa   : > { %p197_p3 = scmp.ne.s32.totalorder %s1167_s27, %s1163_s26  ;;  %p198_p4 = scmp.eq.s32.totalorder %s965_s30, 3 }
   0xb   : > { %s1255_s11 = scalar_select %p179_p1, %s1171_s28, %s181_s9  }
   0xc   : > { %p1257_p5 = por %p192_p2, %p191_p0  ;;  %p1261_p6 = por %p198_p4, %p197_p3 }
   0xd   : > { %p968_p7 = scmp.ge.s32.totalorder %s1175_s29, 1  ;;  %p251_p8 = scmp.lt.s32.totalorder %s1175_s29, 5 }
   0xf   : > { %p252_p9 = pnand %p968_p7, %p251_p8 }
  0x10   : > { %v1107_v1 = vld [vmem:[%s1497_s1] sm:$0xff] (!%p252_p9)   ;;  %s1270_s16 = sshll.u32 (!%p252_p9), %s964_s6, 4  ;;  %v1108_v2 = vld [vmem:[%s1497_s1 + $0x8] sm:$0xff] (!%p252_p9)   ;;  %vm348_vm0 = vcmask (!%p252_p9), 261120   ;;  %v1111_v29 = vld [vmem:[%s1499_s3 + $0x10] sm:$0xff] (!%p252_p9)   ;;  %vm533_vm1 = vcmask (!%p252_p9), 523264  }
  0x11   : > { %255 = sbr.rel (%p252_p9) target bundleno = 702 (0x2be), region = 48  ;;  %p291_p10 = scmp.lt.s32.totalorder (!%p252_p9), %s1270_s16, 62  ;;  %1021 = vmatprep.subr.bf16.mxu0 (!%p252_p9), %v1107_v1  ;;  %v1109_v3 = vld [vmem:[%s1499_s3] sm:$0xff] (!%p252_p9)   ;;  %v1110_v4 = vld [vmem:[%s1499_s3 + $0x8] sm:$0xff] (!%p252_p9)   ;;  %v1112_v30 = vld [vmem:[%s1499_s3 + $0x18] sm:$0xff] (!%p252_p9)   ;;  %vm795_vm2 = vcmask (!%p252_p9), 130112  }
  0x12   : > { %1022 = vmatpush3.bf16.msra.mxu0 (!%p252_p9), %v1107_v1  ;;  %1041 = vmatprep.subr.bf16.mxu1 (!%p252_p9), %v1109_v3  ;;  %v971_v31 = vld [vmem:[%s1498_s2] ss:$0 sm:$0xff] (!%p252_p9)  ;;  %vm802_vm3 = vcmask (!%p252_p9), 195712   ;;  %vm809_vm4 = vcmask (!%p252_p9), 261312   ;;  %vm816_vm5 = vcmask (!%p252_p9), 326912   ;;  %vm823_vm6 = vcmask (!%p252_p9), 392512   ;;  %s1452_s9 = scalar_lea.hbm (!%p252_p9), %s1503_s7, %s1270_s16 }
  0x13   : > { %1023 = vmatprep.subr.bf16.mxu0 (!%p252_p9), %v1108_v2  ;;  %1042 = vmatpush3.bf16.msra.mxu1 (!%p252_p9), %v1109_v3  ;;  %vm830_vm7 = vcmask (!%p252_p9), 458112   ;;  %vm837_vm8 = vcmask (!%p252_p9), 523712   ;;  %vm844_vm9 = vcmask (!%p252_p9), 589312   ;;  %vm851_vm10 = vcmask (!%p252_p9), 654912   ;;  %s284_s23 = sand.u32 (!%p252_p9), 1, %s1167_s27   ;;  %s1178_s15 = smov (!%p252_p9), [#allocation3]  }
  0x14   : > { %1043 = vmatprep.subr.bf16.mxu1 (!%p252_p9), %v1110_v4  ;;  %vm858_vm11 = vcmask (!%p252_p9), 720512   ;;  %vm865_vm12 = vcmask (!%p252_p9), 786112   ;;  %vm872_vm13 = vcmask (!%p252_p9), 851712   ;;  %vm879_vm14 = vcmask (!%p252_p9), 917312   ;;  %s898_s10 = scalar_lea.sflag (!%p252_p9), [#allocation4], %s284_s23  ;;  %s1117_s17 = sshll.u32 (!%p252_p9), %s1178_s15, 4  ;;  %s1118_s17 = int_to_ptr.vmem [resolvable:$false] %s1117_s17 }
  0x15   : > { %vm886_vm15 = vcmask (!%p252_p9), 982912   ;;  %s1119_s18 = scalar_lea.vmem (!%p252_p9), %s1118_s17, 32 }
  0x16   : > { %1024 = vmatpush3.bf16.msra.mxu0 (!%p252_p9), %v1108_v2 }
  0x17   : > { %1044 = vmatpush3.bf16.msra.mxu1 (!%p252_p9), %v1110_v4 }
  0x18   : > { %s292_s21 = scalar_select %p291_p10, %s1270_s16, 62  ;;  %1045 = vmatprep.subr.bf16.mxu1 %v1111_v29 }
  0x1a   : > { %s970_s24 = sshll.u32 %s292_s21, 3 }
  0x1b   : > { %s1286_s30 = scalar_lea.vmem %s1496_s0, %s970_s24  ;;  %1046 = vmatpush3.bf16.msra.mxu1 %v1111_v29  ;;  %s285_s24 = scalar_lea.vmem [#allocation3], %s284_s23 }
  0x1c   : > { %v301_v5 = vld [vmem:[%s1286_s30] sm:$0xff]  ;;  %v302_v6 = vld [vmem:[%s1286_s30 + $0x8] sm:$0xff]  ;;  %v303_v7 = vld [vmem:[%s1286_s30 + $0x10] sm:$0xff]  ;;  %1047 = vmatprep.subr.bf16.mxu1 %v1112_v30  ;;  %s910_s25 = sshll.u32 %s285_s24, 4  ;;  %s1454_s25 = int_to_ptr.vmem [resolvable:$true] %s910_s25 }
  0x1d   : > { %v317_v8 = vpack.c.bf16 %v302_v6, %v301_v5  ;;  %v304_v9 = vld [vmem:[%s1286_s30 + $0x18] sm:$0xff]  ;;  %v305_v10 = vld [vmem:[%s1286_s30 + $0x20] sm:$0xff]  ;;  %v306_v11 = vld [vmem:[%s1286_s30 + $0x28] sm:$0xff]  ;;  %s1113_s14 = scalar_lea.vmem %s1454_s25, 16  ;;  %p1120_p0 = scmp.lt.s32.totalorder %s1454_s25, %s1118_s17 }
  0x1e   : > { %v318_v12 = vpack.c.bf16 %v304_v9, %v303_v7  ;;  %v319_v13 = vpack.c.bf16 %v306_v11, %v305_v10  ;;  %v307_v14 = vld [vmem:[%s1286_s30 + $0x30] sm:$0xff]  ;;  %v308_v15 = vld [vmem:[%s1286_s30 + $0x38] sm:$0xff]  ;;  %v309_v16 = vld [vmem:[%s1286_s30 + $0x40] sm:$0xff]  ;;  %p1114_p11 = scmp.ne.s32.totalorder %s1454_s25, %s1113_s14  ;;  %p1121_p1 = scmp.lt.s32.totalorder %s1119_s18, %s1113_s14 }
  0x1f   : > { %1025 = vmatprep.mubr.msk.bf16.mxu0 %vm348_vm0, %v317_v8  ;;  %v310_v17 = vld [vmem:[%s1286_s30 + $0x48] sm:$0xff]  ;;  %v320_v18 = vpack.c.bf16 %v308_v15, %v307_v14  ;;  %v311_v20 = vld [vmem:[%s1286_s30 + $0x50] sm:$0xff]  ;;  %v312_v21 = vld [vmem:[%s1286_s30 + $0x58] sm:$0xff]  ;;  %1048 = vmatpush3.bf16.msra.mxu1 %v1112_v30 }
  0x20   : > { %1026 = vmatmul.mubr.msk.bf16.vlgmr.msra.gmra.mrb[0].mxu0 %vm348_vm0, %v318_v12  ;;  %v321_v19 = vpack.c.bf16 %v310_v17, %v309_v16  ;;  %v313_v22 = vld [vmem:[%s1286_s30 + $0x60] sm:$0xff]  ;;  %v314_v23 = vld [vmem:[%s1286_s30 + $0x68] sm:$0xff]  ;;  %v322_v24 = vpack.c.bf16 %v312_v21, %v311_v20  ;;  %v315_v26 = vld [vmem:[%s1286_s30 + $0x70] sm:$0xff]  ;;  %p1115_p12 = pnand %p1114_p11, %p1257_p5  ;;  %p1122_p2 = por %p1121_p1, %p1120_p0 }
  0x21   : > { %1029 = vmatprep.mubr.msk.bf16.mxu0 %vm348_vm0, %v319_v13  ;;  %v323_v25 = vpack.c.bf16 %v314_v23, %v313_v22  ;;  %v316_v27 = vld [vmem:[%s1286_s30 + $0x78] sm:$0xff] }
  0x22   : > { %v324_v28 = vpack.c.bf16 %v316_v27, %v315_v26  ;;  %p1116_p13 = pneg %p1115_p12 }
  0x24   : > { %p1123_p3 = pnand %p1122_p2, %p1116_p13 }
  0x28   : > { %1030 = vmatmul.mubr.msk.bf16.gmra.mrb[4].mxu0 %vm348_vm0, %v320_v18 }
  0x29   : > { %1033 = vmatprep.mubr.msk.bf16.mxu0 %vm348_vm0, %v321_v19 }
  0x30   : > { %1034 = vmatmul.mubr.msk.bf16.gmra.mrb[8].mxu0 %vm348_vm0, %v322_v24  ;;  %v1177_v24 = vmov 0  }
  0x31   : > { %1037 = vmatprep.mubr.msk.bf16.mxu0 %vm348_vm0, %v323_v25  ;;  %1105 = vset.pattern.permute.xlu1 %v1177_v24  ;;  %v1332_v25 = vld [vmem:[%s1500_s4] ss:$0 sm:$0xff] }
  0x32   : > { %1106 = vset.pattern.permute.xlu0 %v1177_v24 }
  0x38   : > { %1038 = vmatmul.mubr.msk.bf16.gmra.mrb[12].mxu0 %vm348_vm0, %v324_v28 }
  0xf3   : > { %v1027_v32 = vpop.f32.mrb[0].mxu0 }
  0xf4   : > { %v416_v33 = vadd.f32 %v1027_v32, %v971_v31  ;;  %v407_v34 = vpop.f32.mrb[1].mxu0 }
  0xf5   : > { %v408_v35 = vadd.f32 %v971_v31, %v407_v34  ;;  %v1028_v36 = vpop.f32.mrb[2].mxu0 }
  0xf6   : > { %v419_v37 = vadd.f32 %v1028_v36, %v971_v31  ;;  %v410_v38 = vpop.f32.mrb[3].mxu0  ;;  %v472_v40 = vmax.f32 %v416_v33, 0.0 }
  0xf7   : > { %v411_v39 = vadd.f32 %v971_v31, %v410_v38  ;;  %v470_v42 = vmax.f32 %v408_v35, 0.0 }
  0xf8   : > { %v473_v41 = vmax.f32 %v419_v37, 0.0 }
  0xf9   : > { %v471_v43 = vmax.f32 %v411_v39, 0.0 }
  0xfa   : > { %v487_v44 = vpack.c.bf16 %v473_v41, %v472_v40 }
  0xfb   : > { %v1031_v45 = vpop.f32.mrb[4].mxu0  ;;  %v486_v46 = vpack.c.bf16 %v471_v43, %v470_v42 }
  0xfc   : > { %v432_v47 = vadd.f32 %v1031_v45, %v971_v31  ;;  %v423_v48 = vpop.f32.mrb[5].mxu0 }
  0xfd   : > { %v424_v49 = vadd.f32 %v971_v31, %v423_v48  ;;  %v1032_v50 = vpop.f32.mrb[6].mxu0  ;;  %1049 = vmatprep.mubr.msk.bf16.mxu1 %vm533_vm1, %v486_v46 }
  0xfe   : > { %v435_v51 = vadd.f32 %v1032_v50, %v971_v31  ;;  %v426_v52 = vpop.f32.mrb[7].mxu0  ;;  %1050 = vmatmul.mubr.msk.bf16.vlgmr.msra.gmra.mrb[0].mxu1 %vm533_vm1, %v487_v44  ;;  %v476_v54 = vmax.f32 %v432_v47, 0.0 }
  0xff   : > { %v427_v53 = vadd.f32 %v971_v31, %v426_v52  ;;  %v474_v56 = vmax.f32 %v424_v49, 0.0 }
 0x100   : > { %v477_v55 = vmax.f32 %v435_v51, 0.0 }
 0x101   : > { %v475_v57 = vmax.f32 %v427_v53, 0.0 }
 0x102   : > { %v489_v58 = vpack.c.bf16 %v477_v55, %v476_v54 }
 0x103   : > { %v488_v59 = vpack.c.bf16 %v475_v57, %v474_v56  ;;  %v1035_v60 = vpop.f32.mrb[8].mxu0 }
 0x104   : > { %v448_v61 = vadd.f32 %v1035_v60, %v971_v31  ;;  %v439_v62 = vpop.f32.mrb[9].mxu0 }
 0x105   : > { %1053 = vmatprep.mubr.msk.bf16.mxu1 %vm533_vm1, %v488_v59  ;;  %v440_v63 = vadd.f32 %v971_v31, %v439_v62  ;;  %v1036_v0 = vpop.f32.mrb[10].mxu0 }
 0x106   : > { %1054 = vmatmul.mubr.msk.bf16.gmra.mrb[4].mxu1 %vm533_vm1, %v489_v58  ;;  %v480_v1 = vmax.f32 %v448_v61, 0.0  ;;  %v451_v2 = vadd.f32 %v1036_v0, %v971_v31  ;;  %v442_v3 = vpop.f32.mrb[11].mxu0 }
 0x107   : > { %v478_v4 = vmax.f32 %v440_v63, 0.0  ;;  %v443_v5 = vadd.f32 %v971_v31, %v442_v3 }
 0x108   : > { %v481_v6 = vmax.f32 %v451_v2, 0.0 }
 0x109   : > { %v479_v7 = vmax.f32 %v443_v5, 0.0 }
 0x10a   : > { %v491_v8 = vpack.c.bf16 %v481_v6, %v480_v1 }
 0x10b   : > { %v490_v9 = vpack.c.bf16 %v479_v7, %v478_v4  ;;  %v1039_v10 = vpop.f32.mrb[12].mxu0 }
 0x10c   : > { %v464_v11 = vadd.f32 %v1039_v10, %v971_v31  ;;  %v455_v12 = vpop.f32.mrb[13].mxu0 }
 0x10d   : > { %1057 = vmatprep.mubr.msk.bf16.mxu1 %vm533_vm1, %v490_v9  ;;  %v456_v13 = vadd.f32 %v971_v31, %v455_v12  ;;  %v1040_v14 = vpop.f32.mrb[14].mxu0 }
 0x10e   : > { %1058 = vmatmul.mubr.msk.bf16.gmra.mrb[8].mxu1 %vm533_vm1, %v491_v8  ;;  %v484_v15 = vmax.f32 %v464_v11, 0.0  ;;  %v467_v16 = vadd.f32 %v1040_v14, %v971_v31  ;;  %v458_v17 = vpop.f32.mrb[15].mxu0 }
 0x10f   : > { %v482_v18 = vmax.f32 %v456_v13, 0.0  ;;  %v459_v19 = vadd.f32 %v971_v31, %v458_v17  ;;  %v1339_v31 = vld [vmem:[%s1501_s5] ss:$0 sm:$0xff] }
 0x110   : > { %v485_v20 = vmax.f32 %v467_v16, 0.0 }
 0x111   : > { %v483_v21 = vmax.f32 %v459_v19, 0.0 }
 0x112   : > { %v493_v22 = vpack.c.bf16 %v485_v20, %v484_v15 }
 0x113   : > { %v492_v23 = vpack.c.bf16 %v483_v21, %v482_v18 }
 0x115   : > { %1061 = vmatprep.mubr.msk.bf16.mxu1 %vm533_vm1, %v492_v23 }
 0x116   : > { %1062 = vmatmul.mubr.msk.bf16.gmra.mrb[12].mxu1 %vm533_vm1, %v493_v22 }
 0x1d1   : > { %v1051_v26 = vpop.f32.mrb[0].mxu1 }
 0x1d2   : > { %v601_v27 = vadd.f32 %v1051_v26, %v1332_v25  ;;  %v592_v28 = vpop.f32.mrb[1].mxu1 }
 0x1d3   : > { %v593_v29 = vadd.f32 %v1332_v25, %v592_v28  ;;  %v1052_v30 = vpop.f32.mrb[2].mxu1 }
 0x1d4   : > { %v657_v32 = vmax.f32 %v601_v27, 0.0  ;;  %v604_v33 = vadd.f32 %v1052_v30, %v1332_v25  ;;  %v595_v34 = vpop.f32.mrb[3].mxu1 }
 0x1d5   : > { %v655_v35 = vmax.f32 %v593_v29, 0.0  ;;  %v596_v36 = vadd.f32 %v1332_v25, %v595_v34  ;;  %v742_v29 = vld [vmem:[#allocation2] sm:$0x1] }
 0x1d6   : > { %v658_v37 = vmax.f32 %v604_v33, 0.0  ;;  %v680_v38 = vmul.f32 %v1339_v31, %v657_v32 }
 0x1d7   : > { %v656_v39 = vmax.f32 %v596_v36, 0.0  ;;  %v678_v40 = vmul.f32 %v1339_v31, %v655_v35 }
 0x1d8   : > { %v700_v41 = vsel %vm348_vm0, %v680_v38, 0.0  ;;  %v681_v42 = vmul.f32 %v1339_v31, %v658_v37 }
 0x1d9   : > { %701 = vadd.xlane.f32.xlu1 %v700_v41  ;;  %v1055_v43 = vpop.f32.mrb[4].mxu1  ;;  %v694_v44 = vsel %vm348_vm0, %v678_v40, 0.0  ;;  %v679_v45 = vmul.f32 %v1339_v31, %v656_v39 }
 0x1da   : > { %v617_v46 = vadd.f32 %v1055_v43, %v1332_v25  ;;  %v608_v47 = vpop.f32.mrb[5].mxu1  ;;  %695 = vadd.xlane.f32.xlu0 %v694_v44  ;;  %v703_v52 = vsel %vm348_vm0, %v681_v42, 0.0 }
 0x1db   : > { %v609_v48 = vadd.f32 %v1332_v25, %v608_v47  ;;  %v1056_v49 = vpop.f32.mrb[6].mxu1  ;;  %v697_v56 = vsel %vm348_vm0, %v679_v45, 0.0 }
 0x1dc   : > { %v661_v50 = vmax.f32 %v617_v46, 0.0  ;;  %v611_v51 = vpop.f32.mrb[7].mxu1  ;;  %v620_v54 = vadd.f32 %v1056_v49, %v1332_v25 }
 0x1dd   : > { %v659_v53 = vmax.f32 %v609_v48, 0.0  ;;  %v612_v55 = vadd.f32 %v1332_v25, %v611_v51  ;;  %704 = vadd.xlane.f32.xlu1 %v703_v52  ;;  %v748_v51 = vlaneseq }
 0x1de   : > { %698 = vadd.xlane.f32.xlu0 %v697_v56  ;;  %v684_v57 = vmul.f32 %v1339_v31, %v661_v50  ;;  %v662_v60 = vmax.f32 %v620_v54, 0.0 }
 0x1df   : > { %v660_v58 = vmax.f32 %v612_v55, 0.0  ;;  %v682_v63 = vmul.f32 %v1339_v31, %v659_v53  ;;  %v1387_v54 = vshrl.u32 %v748_v51, 7  ;;  %v1390_v55 = vand.u32 127, %v748_v51 }
 0x1e0   : > { %v712_v59 = vsel %vm348_vm0, %v684_v57, 0.0  ;;  %v685_v9 = vmul.f32 %v1339_v31, %v662_v60 }
 0x1e1   : > { %v683_v61 = vmul.f32 %v1339_v31, %v660_v58  ;;  %v1059_v62 = vpop.f32.mrb[8].mxu1  ;;  %v706_v8 = vsel %vm348_vm0, %v682_v63, 0.0  ;;  %v797_v60 = vadd.s32 4294967280, %v1390_v55 }
 0x1e2   : > { %713 = vadd.xlane.f32.xlu0 %v712_v59  ;;  %v633_v0 = vadd.f32 %v1059_v62, %v1332_v25  ;;  %v624_v1 = vpop.f32.mrb[9].mxu1  ;;  %v715_v15 = vsel %vm348_vm0, %v685_v9, 0.0  ;;  %v790_v59 = vadd.s32 4294967288, %v1390_v55  ;;  %v811_v9 = vadd.s32 4294967264, %v1390_v55 }
 0x1e3   : > { %v709_v2 = vsel %vm348_vm0, %v683_v61, 0.0  ;;  %v625_v3 = vadd.f32 %v1332_v25, %v624_v1  ;;  %v1060_v4 = vpop.f32.mrb[10].mxu1 }
 0x1e4   : > { %710 = vadd.xlane.f32.xlu1 %v709_v2  ;;  %v665_v5 = vmax.f32 %v633_v0, 0.0  ;;  %v636_v6 = vadd.f32 %v1060_v4, %v1332_v25  ;;  %v627_v7 = vpop.f32.mrb[11].mxu1  ;;  %v788_v0 = vsub.s32 %v1390_v55, %v1387_v54  ;;  %v793_v1 = vsub.s32 %v790_v59, %v1387_v54 }
 0x1e5   : > { %v663_v11 = vmax.f32 %v625_v3, 0.0  ;;  %v628_v12 = vadd.f32 %v1332_v25, %v627_v7  ;;  %v800_v3 = vsub.s32 %v797_v60, %v1387_v54 }
 0x1e6   : > { %707 = vadd.xlane.f32.xlu0 %v706_v8  ;;  %v666_v10 = vmax.f32 %v636_v6, 0.0  ;;  %v688_v13 = vmul.f32 %v1339_v31, %v665_v5  ;;  %v804_v6 = vadd.s32 4294967272, %v1390_v55 }
 0x1e7   : > { %v664_v18 = vmax.f32 %v628_v12, 0.0  ;;  %v686_v21 = vmul.f32 %v1339_v31, %v663_v11 }
 0x1e8   : > { %v689_v14 = vmul.f32 %v1339_v31, %v666_v10  ;;  %v724_v19 = vsel %vm348_vm0, %v688_v13, 0.0  ;;  %v807_v12 = vsub.s32 %v804_v6, %v1387_v54  ;;  %v818_v13 = vadd.s32 4294967256, %v1390_v55 }
 0x1e9   : > { %v1063_v16 = vpop.f32.mrb[12].mxu1  ;;  %v718_v26 = vsel %vm348_vm0, %v686_v21, 0.0  ;;  %v687_v28 = vmul.f32 %v1339_v31, %v664_v18 }
 0x1ea   : > { %716 = vadd.xlane.f32.xlu0 %v715_v15  ;;  %v640_v17 = vpop.f32.mrb[13].mxu1  ;;  %v649_v20 = vadd.f32 %v1063_v16, %v1332_v25  ;;  %v814_v16 = vsub.s32 %v811_v9, %v1387_v54 }
 0x1eb   : > { %v1064_v22 = vpop.f32.mrb[14].mxu1  ;;  %v641_v27 = vadd.f32 %v1332_v25, %v640_v17  ;;  %v721_v32 = vsel %vm348_vm0, %v687_v28, 0.0 }
 0x1ec   : > { %v643_v23 = vpop.f32.mrb[15].mxu1  ;;  %v669_v24 = vmax.f32 %v649_v20, 0.0  ;;  %v652_v35 = vadd.f32 %v1064_v22, %v1332_v25  ;;  %v821_v22 = vsub.s32 %v818_v13, %v1387_v54 }
 0x1ed   : > { %v667_v30 = vmax.f32 %v641_v27, 0.0  ;;  %v644_v33 = vadd.f32 %v1332_v25, %v643_v23  ;;  %v727_v25 = vsel %vm348_vm0, %v689_v14, 0.0 }
 0x1ee   : > { %725 = vadd.xlane.f32.xlu0 %v724_v19  ;;  %v692_v34 = vmul.f32 %v1339_v31, %v669_v24  ;;  %v670_v39 = vmax.f32 %v652_v35, 0.0  ;;  %v825_v19 = vadd.s32 4294967248, %v1390_v55 }
 0x1ef   : > { %v668_v36 = vmax.f32 %v644_v33, 0.0  ;;  %v690_v38 = vmul.f32 %v1339_v31, %v667_v30  ;;  %v846_v33 = vadd.s32 4294967224, %v1390_v55 }
 0x1f0   : > { %v736_v37 = vsel %vm348_vm0, %v692_v34, 0.0  ;;  %v693_v43 = vmul.f32 %v1339_v31, %v670_v39  ;;  %v828_v24 = vsub.s32 %v825_v19, %v1387_v54 }
 0x1f1   : > { %v730_v40 = vsel %vm348_vm0, %v690_v38, 0.0  ;;  %v691_v41 = vmul.f32 %v1339_v31, %v668_v36  ;;  %v750_v31 = vsub.s32 0, %v1387_v54 }
 0x1f2   : > { %719 = vadd.xlane.f32.xlu0 %v718_v26  ;;  %v739_v44 = vsel %vm348_vm0, %v693_v43, 0.0  ;;  %v832_v26 = vadd.s32 4294967240, %v1390_v55  ;;  %v853_v43 = vadd.s32 4294967216, %v1390_v55 }
 0x1f3   : > { %v733_v42 = vsel %vm348_vm0, %v691_v41, 0.0  ;;  %vm893_vm0 = vcmask 1048512  }
 0x1f4   : > { %v835_v35 = vsub.s32 %v832_v26, %v1387_v54  ;;  %v856_v51 = vsub.s32 %v853_v43, %v1387_v54 }
 0x1f5   : > { %745 = vperm.xlu1 %1105, %v742_v29   ;;  %v839_v29 = vadd.s32 4294967232, %v1390_v55 }
 0x1f6   : > { %722 = vadd.xlane.f32.xlu0 %v721_v32 }
 0x1f7   : > { %v842_v38 = vsub.s32 %v839_v29, %v1387_v54 }
 0x1fa   : > { %737 = vadd.xlane.f32.xlu0 %v736_v37 }
 0x1fe   : > { %731 = vadd.xlane.f32.xlu0 %v730_v40  ;;  %v849_v40 = vsub.s32 %v846_v33, %v1387_v54 }
 0x202   : > { %734 = vadd.xlane.f32.xlu0 %v733_v42 }
 0x206   : > { %740 = vadd.xlane.f32.xlu0 %v739_v44 }
 0x219   : > { %728 = vadd.xlane.f32.xlu1 %v727_v25 }
 0x266   : > { %v702_v48 = vpop.xlane.xlu1 %701 }
 0x267   : > { %v696_v45 = vpop.xlane.xlu0 %695 }
 0x26a   : > { %v705_v50 = vpop.xlane.xlu1 %704 }
 0x26b   : > { %v699_v46 = vpop.xlane.xlu0 %698 }
 0x26f   : > { %v714_v47 = vpop.xlane.xlu0 %713 }
 0x271   : > { %v711_v52 = vpop.xlane.xlu1 %710 }
 0x273   : > { %v708_v49 = vpop.xlane.xlu0 %707 }
 0x275   : > { %v746_v56 = vpop.permute.xlu1 %745 }
 0x276   : > { %v1394_v58 = vrot.slane %v746_v56, %v750_v31  ;;  %v888_v31 = vadd.s32 4294967176, %v1390_v55 }
 0x277   : > { %v717_v53 = vpop.xlane.xlu0 %716 }
 0x278   : > { %v752_v62 = vadd.f32 %v1394_v58, %v696_v45  ;;  %v753_v63 = vadd.f32 %v1394_v58, %v699_v46  ;;  %v754_v2 = vadd.f32 %v1394_v58, %v702_v48  ;;  %v755_v10 = vadd.f32 %v1394_v58, %v705_v50 }
 0x279   : > { %v756_v14 = vadd.f32 %v1394_v58, %v708_v49  ;;  %v757_v20 = vadd.f32 %v1394_v58, %v711_v52  ;;  %v758_v27 = vadd.f32 %v1394_v58, %v714_v47  ;;  %v759_v36 = vadd.f32 %v1394_v58, %v717_v53 }
 0x27a   : > { %v789_v4 = vrot.slane %v752_v62, %v788_v0  ;;  %v794_v5 = vrot.slane %v753_v63, %v793_v1  ;;  %v801_v8 = vrot.slane %v754_v2, %v800_v3  ;;  %v808_v18 = vrot.slane %v755_v10, %v807_v12 }
 0x27b   : > { %v1392_v57 = vpop.xlane.xlu0 %725  ;;  %v815_v23 = vrot.slane %v756_v14, %v814_v16  ;;  %v822_v32 = vrot.slane %v757_v20, %v821_v22  ;;  %v829_v37 = vrot.slane %v758_v27, %v828_v24  ;;  %v836_v25 = vrot.slane %v759_v36, %v835_v35 }
 0x27c   : > { %v796_v11 = vsel %vm795_vm2, %v794_v5, %v789_v4  ;;  %v860_v45 = vadd.s32 4294967208, %v1390_v55  ;;  %v867_v47 = vadd.s32 4294967200, %v1390_v55  ;;  %v874_v50 = vadd.s32 4294967192, %v1390_v55 }
 0x27d   : > { %v803_v15 = vsel %vm802_vm3, %v801_v8, %v796_v11  ;;  %v762_v52 = vadd.f32 %v1394_v58, %v1392_v57  ;;  %v881_v53 = vadd.s32 4294967184, %v1390_v55  ;;  %v891_v5 = vsub.s32 %v888_v31, %v1387_v54 }
 0x27e   : > { %v810_v21 = vsel %vm809_vm4, %v808_v18, %v803_v15  ;;  %v863_v56 = vsub.s32 %v860_v45, %v1387_v54  ;;  %v870_v60 = vsub.s32 %v867_v47, %v1387_v54  ;;  %v877_v1 = vsub.s32 %v874_v50, %v1387_v54 }
 0x27f   : > { %v720_v61 = vpop.xlane.xlu0 %719  ;;  %v817_v28 = vsel %vm816_vm5, %v815_v23, %v810_v21  ;;  %v857_v55 = vrot.slane %v762_v52, %v856_v51  ;;  %v884_v3 = vsub.s32 %v881_v53, %v1387_v54 }
 0x280   : > { %v824_v34 = vsel %vm823_vm6, %v822_v32, %v817_v28  ;;  %v760_v39 = vadd.f32 %v1394_v58, %v720_v61 }
 0x281   : > { %v831_v42 = vsel %vm830_vm7, %v829_v37, %v824_v34 }
 0x282   : > { %v843_v46 = vrot.slane %v760_v39, %v842_v38  ;;  %v838_v48 = vsel %vm837_vm8, %v836_v25, %v831_v42 }
 0x283   : > { %v723_v7 = vpop.xlane.xlu0 %722 }
 0x284   : > { %v761_v41 = vadd.f32 %v1394_v58, %v723_v7  ;;  %v845_v59 = vsel %vm844_vm9, %v843_v46, %v838_v48 }
 0x286   : > { %v850_v49 = vrot.slane %v761_v41, %v849_v40 }
 0x287   : > { %v738_v17 = vpop.xlane.xlu0 %737 }
 0x288   : > { %v852_v0 = vsel %vm851_vm10, %v850_v49, %v845_v59  ;;  %v766_v4 = vadd.f32 %v1394_v58, %v738_v17 }
 0x289   : > { %v859_v9 = vsel %vm858_vm11, %v857_v55, %v852_v0 }
 0x28a   : > { %v885_v12 = vrot.slane %v766_v4, %v884_v3 }
 0x28b   : > { %v732_v30 = vpop.xlane.xlu0 %731 }
 0x28c   : > { %v764_v61 = vadd.f32 %v1394_v58, %v732_v30 }
 0x28e   : > { %v871_v8 = vrot.slane %v764_v61, %v870_v60 }
 0x28f   : > { %v735_v44 = vpop.xlane.xlu0 %734 }
 0x290   : > { %v765_v57 = vadd.f32 %v1394_v58, %v735_v44 }
 0x292   : > { %v878_v10 = vrot.slane %v765_v57, %v877_v1 }
 0x293   : > { %v741_v62 = vpop.xlane.xlu0 %740 }
 0x294   : > { %v767_v6 = vadd.f32 %v1394_v58, %v741_v62 }
 0x296   : > { %v892_v54 = vrot.slane %v767_v6, %v891_v5 }
 0x2a6   : > { %v729_v63 = vpop.xlane.xlu1 %728 }
 0x2a7   : > { %v763_v2 = vadd.f32 %v1394_v58, %v729_v63 }
 0x2a9   : > { %v864_v7 = vrot.slane %v763_v2, %v863_v56 }
 0x2ab   : > { %v866_v11 = vsel %vm865_vm12, %v864_v7, %v859_v9 }
 0x2ac   : > { %v873_v13 = vsel %vm872_vm13, %v871_v8, %v866_v11 }
 0x2ad   : > { %v880_v14 = vsel %vm879_vm14, %v878_v10, %v873_v13 }
 0x2ae   : > { %v887_v58 = vsel %vm886_vm15, %v885_v12, %v880_v14 }
 0x2af   : > { %v894_v15 = vsel %vm893_vm0, %v892_v54, %v887_v58 }
 0x2b0   : > { %896 = vst [vmem:[%s285_s24] sm:$0x1] %v894_v15 }
 0x2b1   : > { %1126 = shalt.err (!%p1123_p3)
}
 0x2b2   : > { %s1127_s16 = scalar_lea.hbm %s1452_s9, 16  ;;  %s1131_s21 = scalar_lea.hbm %s1503_s7, 64 }
 0x2b3   : > { %p1128_p4 = scmp.ne.s32.totalorder %s1452_s9, %s1127_s16  ;;  %p1132_p9 = scmp.lt.u32.totalorder %s1452_s9, %s1503_s7 }
 0x2b4   : > { %p1133_p10 = scmp.lt.u32.totalorder %s1131_s21, %s1127_s16  ;;  %p1135_p12 = scmp.lt.u32.totalorder %s1127_s16, %s1452_s9 }
 0x2b5   : > { %p1129_p7 = pnand %p1128_p4, %p1257_p5 }
 0x2b6   : > { %p1134_p11 = por %p1133_p10, %p1132_p9 }
 0x2b7   : > { %p1130_p8 = pneg %p1129_p7 }
 0x2b8   : > { %p1136_p13 = por %p1135_p12, %p1134_p11 }
 0x2ba   : > { %p1137_p0 = pnand %p1136_p13, %p1130_p8 }
 0x2bc   : > { %1140 = shalt.err (!%p1137_p0)
}
 0x2bd   : > { %1065 = dma.vmem_to_hbm [thread:$0]  (%p1257_p5), %s1454_s25, 16, %s1452_s9, %s898_s10  }
 0x2be PF: > { %p1071_p1 = scmp.ge.s32.totalorder %s1175_s29, 2  ;;  %s922_s24 = sand.u32 1, %s1163_s26  }
 0x2bf   : > { %s923_s6 = scalar_lea.sflag [#allocation4], %s922_s24 }
 0x2c0   : > { %p1068_p2 = pnand %p1071_p1, %p1261_p6 }
 0x2c2   : > { %1158 = dma.done.wait (!%p1068_p2), %s923_s6, 16  }
 0x2c3   : > { %1160 = vsyncadd (!%p1068_p2), %s923_s6, 4294967280  ;;  %p19_p3 = scmp.ge.s32.totalorder %s1245_s8, 6   ;;  %s1506_s26 = smov %s1167_s27 }
 0x2c4   : > { %s1507_s27 = smov %s1171_s28  ;;  %s1508_s28 = smov %s1255_s11 }
 0x2c5   : > { %s1509_s29 = smov %s1245_s8  ;;  %21 = sbr.rel (!%p19_p3) target bundleno = 6 (0x6), region = 83 }
 0x2cc   :  { %927 = vsyncpa [#allocation4], 1 }
 0x2cd   :  { %929 = vsyncpa [#allocation4 + $0x1], 1 }

</bundles_post_ra>
